<compile_context>
chip_gen: v5e
topology: v5e:2x2
jax: 0.10.0
libtpu: 0.0.40
codegen_flags: <defaults>
</compile_context>

<pallas_src>
import functools
import math

import numpy as np
import jax
import jax.numpy as jnp
from jax.experimental import pallas as pl
from jax.experimental.pallas import tpu as pltpu


# Opt-in: cast f32 operands to bf16 before the MXU (f32 accumulation kept).
# ~3x matmul throughput on v6e/v7x; validate against tolerances before use.
_MXU_BF16_INPUTS = False


# ----------------------------------------------------------------------------
# Small helpers.
# ----------------------------------------------------------------------------
def _ceil_to(a, b):
    return -(-a // b) * b


def _sublane(dtype):
    # Sublane packing multiple: 8 for 32-bit, 16 for 16-bit, 32 for 8-bit.
    return {4: 8, 2: 16, 1: 32}.get(jnp.dtype(dtype).itemsize, 8)


@functools.lru_cache(maxsize=1)
def _vmem_capacity_bytes():
    """Per-TensorCore VMEM capacity, device-derived with safe fallbacks."""
    try:
        cap = getattr(pltpu.get_tpu_info(), "vmem_capacity_bytes", None)
        if cap:
            return int(cap)
    except Exception:
        pass
    try:
        kind = jax.devices()[0].device_kind.lower()
        if "v5" in kind or "v6" in kind:
            return 128 << 20
    except Exception:
        pass
    return 64 << 20          # conservative: v7x per-TensorCore VMEM


# ----------------------------------------------------------------------------
# Pallas kernels: out = x @ W with f32 accumulation.
# ----------------------------------------------------------------------------
def _mm_direct_kernel(x_ref, w_ref, o_ref):
    # Single-K-tile path (includes the VMEM-resident-W plan): no accumulator
    # zero-init / read-modify-write, direct lane-dense store.
    o_ref[...] = jnp.dot(x_ref[...], w_ref[...],
                         preferred_element_type=jnp.float32).astype(o_ref.dtype)


def _mm_acc_kernel(x_ref, w_ref, o_ref, acc_ref):
    @pl.when(pl.program_id(2) == 0)
    def _init():
        acc_ref[...] = jnp.zeros_like(acc_ref)

    acc_ref[...] += jnp.dot(x_ref[...], w_ref[...],
                            preferred_element_type=jnp.float32)

    @pl.when(pl.program_id(2) == pl.num_programs(2) - 1)
    def _store():
        o_ref[...] = acc_ref[...].astype(o_ref.dtype)


def _pallas_matmul(x, w):
    """x: (M, K) @ w: (K, N) -> (M, N); f32 accumulation, output in x's dtype."""
    M, K = x.shape
    K2, N = w.shape
    assert K == K2
    out_dtype = x.dtype

    if _MXU_BF16_INPUTS and x.dtype == jnp.float32:
        x, w = x.astype(jnp.bfloat16), w.astype(jnp.bfloat16)
    else:
        w = w.astype(x.dtype)

    isz = jnp.dtype(x.dtype).itemsize
    sub = _sublane(x.dtype)
    budget = int(0.70 * _vmem_capacity_bytes())   # ~45 MiB v7x, ~90 MiB v5e/v6e

    # ---- tile plan ---------------------------------------------------------
    # Preferred: W fully VMEM-resident (TN=N, TK=K, constant W block index ->
    # W is fetched from HBM exactly once), no K reduction axis, no accumulator.
    TB = TN = TK = None
    w_bytes = K * N * isz
    for tb in (512, 256, 128):
        if w_bytes + 2 * tb * (K + N) * isz <= budget:
            TB, TN, TK = tb, N, K
            break
    if TB is None:
        # W too large to keep resident: stream big (TK, TN) tiles, f32 acc,
        # reduction axis last in the grid.
        TB, TN, TK = 512, min(N, 512), min(K, 2048)

        def _need():
            return 2 * (TB * TK + TK * TN + TB * TN) * isz + TB * TN * 4

        while _need() > budget and TK > 512:
            TK //= 2
        while _need() > budget and TB > 128:
            TB //= 2
        while _need() > budget and TN > 128:
            TN //= 2

    # Small-batch clamp (round to the dtype's sublane multiple), then make sure
    # a "parallel" grid axis has extent >= 2 when the grid would otherwise be a
    # single program (v7x has 2 TensorCores; ~0.35 us extra step elsewhere).
    if M < TB:
        TB = _ceil_to(M, sub)
    if pl.cdiv(M, TB) == 1 and N // TN == 1 and M > sub:
        TB = max(sub, _ceil_to(-(-M // 2), sub))

    # Only a single overhanging block (M < TB) needs a host-side pad, and it is
    # < `sub` rows; ragged *last* batch blocks are masked by Pallas directly
    # (padding is only along M, so garbage rows never touch valid outputs).
    Mp = TB if M < TB else M
    if Mp != M:
        x = jnp.pad(x, ((0, Mp - M), (0, 0)))

    grid = (pl.cdiv(Mp, TB), N // TN, K // TK)       # reduction axis last
    single_k = grid[2] == 1
    kernel = _mm_direct_kernel if single_k else _mm_acc_kernel
    scratch = () if single_k else (pltpu.VMEM((TB, TN), jnp.float32),)

    if single_k:
        live = (w_bytes if TN == N else 2 * TK * TN * isz) + 2 * TB * (TK + TN) * isz
    else:
        live = 2 * (TB * TK + TK * TN + TB * TN) * isz + TB * TN * 4
    vmem_limit = int(min(budget, max(8 << 20, int(1.5 * live) + (2 << 20))))

    cost = pl.CostEstimate(
        flops=2 * Mp * K * N,
        transcendentals=0,
        bytes_accessed=(Mp * K + K * N) * isz
        + Mp * N * jnp.dtype(out_dtype).itemsize,
    )

    out = pl.pallas_call(
        kernel,
        out_shape=jax.ShapeDtypeStruct((Mp, N), out_dtype),
        grid_spec=pltpu.PrefetchScalarGridSpec(
            num_scalar_prefetch=0,
            grid=grid,
            in_specs=[
                pl.BlockSpec((TB, TK), lambda i, j, k: (i, k)),   # x tile
                pl.BlockSpec((TK, TN), lambda i, j, k: (k, j)),   # W tile
            ],
            out_specs=pl.BlockSpec((TB, TN), lambda i, j, k: (i, j)),
            scratch_shapes=scratch,
        ),
        compiler_params=pltpu.CompilerParams(
            dimension_semantics=("parallel", "parallel", "arbitrary"),
            vmem_limit_bytes=vmem_limit,
        ),
        cost_estimate=cost,
    )(x, w)
    return out if Mp == M else out[:M]


# ----------------------------------------------------------------------------
# Factor application (ground-truth semantics) and operator composition.
# ----------------------------------------------------------------------------
def _apply_factors(prob, x2, increasing_stride):
    """Apply the m-1 permutation factors to x2: (rows, n). Pure elementwise."""
    rows, n = x2.shape
    nf = prob.shape[0]
    order = range(nf) if not increasing_stride else range(nf - 1, -1, -1)
    out = x2
    for i in order:
        s = n >> i
        p0, p1, p2 = prob[i, 0], prob[i, 1], prob[i, 2]
        y = out.reshape(rows, n // s, s)
        y_eo = jnp.concatenate([y[..., 0::2], y[..., 1::2]], axis=-1)
        y = (1 - p0) * y + p0 * y_eo
        first, second = y[..., : s // 2], y[..., s // 2:]
        first = (1 - p1) * first + p1 * first[..., ::-1]
        second = (1 - p2) * second + p2 * second[..., ::-1]
        out = jnp.concatenate([first, second], axis=-1).reshape(rows, n)
    return out


def _composed_operator(prob, n, increasing_stride):
    """W (n, n) with forward(x) == x @ W.  Built structure-aware by pushing the
    identity through the factor-by-factor reference: O((m-1) n^2) elementwise,
    no dense n^3 matmuls."""
    return _apply_factors(prob, jnp.eye(n, dtype=jnp.float32), increasing_stride)


def _apply_operator(w, x2):
    """x2: (rows, n) -> x2 @ w.  For n < 128, pack k = 128 // n rows along the
    lane axis and replicate w block-diagonally so stores are 128-lane dense."""
    rows, n = x2.shape
    k = 128 // n if n < 128 else 1
    if k > 1:
        rows_p = _ceil_to(rows, k)
        if rows_p != rows:
            x2 = jnp.pad(x2, ((0, rows_p - rows), (0, 0)))
        xp = x2.reshape(rows_p // k, k * n)
        wp = jnp.kron(jnp.eye(k, dtype=w.dtype), w)
        out = _pallas_matmul(xp, wp)
        return out.reshape(rows_p, n)[:rows]
    return _pallas_matmul(x2, w)


def _apply_operator_to_input(w, x):
    """Handle real (batch, n) and complex-as-(batch, n, 2) layouts."""
    orig_shape = x.shape
    n = orig_shape[1]
    if x.ndim == 3:                   # complex stored as (batch, n, 2)
        b = orig_shape[0]
        x2 = jnp.transpose(x, (0, 2, 1)).reshape(b * 2, n)
    else:
        x2 = x
    out2 = _apply_operator(w, x2)
    if len(orig_shape) == 3:
        out2 = jnp.transpose(out2.reshape(orig_shape[0], 2, n), (0, 2, 1))
    return out2


def permutation_mult(prob, x, increasing_stride=False):
    """prob: (m-1, 3); x: (batch, size) real or (batch, size, 2) complex."""
    n = x.shape[1]
    m = int(math.log2(n))
    nf = m - 1
    assert prob.shape == (nf, 3)
    if nf == 0:                       # size == 2: no factors -> identity
        return x
    w = _composed_operator(prob, n, increasing_stride)
    return _apply_operator_to_input(w, x)


# ----------------------------------------------------------------------------
# Module analog of torch Permutation (forward only), deterministic init.
# ----------------------------------------------------------------------------
class Permutation:
    def __init__(self, size, share_logit=False, increasing_stride=False, key=None):
        m = int(math.ceil(math.log2(size)))
        assert size == 1 << m, 'size must be a power of 2'
        self.size, self.m = size, m
        self.share_logit = share_logit
        self.increasing_stride = increasing_stride
        key = jax.random.PRNGKey(0) if key is None else key
        shape = (3,) if share_logit else (m - 1, 3)
        self.logit = jax.random.normal(key, shape, jnp.float32)  # ~ torch.randn
        self._w = None
        self._w_key = None

    def _operator(self):
        cache_key = (id(self.logit), self.increasing_stride)
        if self._w is not None and self._w_key == cache_key:
            return self._w
        prob = jax.nn.sigmoid(self.logit)
        if self.share_logit:
            prob = jnp.broadcast_to(prob[None, :], (self.m - 1, 3))
        w = _composed_operator(prob, self.size, self.increasing_stride)
        try:
            concrete = not isinstance(self.logit, jax.core.Tracer)
        except Exception:
            concrete = False
        if concrete:                  # cache across eager calls, never tracers
            self._w, self._w_key = w, cache_key
        return w

    def __call__(self, x):
        if self.m <= 1:               # size == 2: identity
            return x
        return _apply_operator_to_input(self._operator(), x)


# ----------------------------------------------------------------------------
# Pure-JAX reference (no Pallas, factor-by-factor) for validation.
# ----------------------------------------------------------------------------
def permutation_mult_ref(prob, x, increasing_stride=False):
    orig_shape = x.shape
    n = orig_shape[1]
    if x.ndim == 3:
        x2 = jnp.transpose(x, (0, 2, 1)).reshape(-1, n)
    else:
        x2 = x
    out = _apply_factors(prob, x2.astype(jnp.float32), increasing_stride).astype(x.dtype)
    if len(orig_shape) == 3:
        out = jnp.transpose(out.reshape(orig_shape[0], 2, n), (0, 2, 1))
    return out


if __name__ == "__main__":
    key = jax.random.PRNGKey(0)
    k_logit, k_x, k_xc, k_x3 = jax.random.split(key, 4)

    # Config 1: size=32 (lane-packed path), real input.
    size, batch = 32, 16
    module = Permutation(size, share_logit=False, increasing_stride=False, key=k_logit)
    x = jax.random.normal(k_x, (batch, size), jnp.float32)
    out = jax.block_until_ready(module(x))
    ref = permutation_mult_ref(jax.nn.sigmoid(module.logit), x, increasing_stride=False)
    np.testing.assert_allclose(np.asarray(out), np.asarray(ref), rtol=1e-4, atol=1e-5)
    assert out.shape == x.shape

    # Config 2: share_logit=True, increasing_stride=True, complex (batch, size, 2).
    module2 = Permutation(size, share_logit=True, increasing_stride=True, key=k_logit)
    xc = jax.random.normal(k_xc, (batch, size, 2), jnp.float32)
    out2 = jax.block_until_ready(module2(xc))
    prob2 = jnp.broadcast_to(jax.nn.sigmoid(module2.logit)[None, :], (module2.m - 1, 3))
    ref2 = permutation_mult_ref(prob2, xc, increasing_stride=True)
    np.testing.assert_allclose(np.asarray(out2), np.asarray(ref2), rtol=1e-4, atol=1e-5)
    assert out2.shape == xc.shape

    # Config 3: size=128 (resident-W path, ragged/masked last batch block).
    size3, batch3 = 128, 10
    module3 = Permutation(size3, share_logit=False, increasing_stride=False, key=k_logit)
    x3 = jax.random.normal(k_x3, (batch3, size3), jnp.float32)
    out3 = jax.block_until_ready(module3(x3))
    ref3 = permutation_mult_ref(jax.nn.sigmoid(module3.logit), x3, increasing_stride=False)
    np.testing.assert_allclose(np.asarray(out3), np.asarray(ref3), rtol=1e-4, atol=1e-5)
    assert out3.shape == x3.shape

    print("KERNEL_OK")
</pallas_src>

<mosaic_0001>
module attributes {stable_mosaic.version = 11 : i64} {
  func.func @_mm_direct_kernel(%arg0: i32, %arg1: i32, %arg2: i32, %arg3: memref<8x128xf32, #tpu.memory_space<vmem>>, %arg4: memref<128x128xf32, #tpu.memory_space<vmem>>, %arg5: memref<8x128xf32, #tpu.memory_space<vmem>>) attributes {dimension_semantics = [#tpu.dimension_semantics<parallel>, #tpu.dimension_semantics<parallel>, #tpu.dimension_semantics<arbitrary>], iteration_bounds = array<i64: 1, 1, 1>, scalar_prefetch = 0 : i64, scratch_operands = 0 : i64, tpu.core_type = #tpu.core_type<tc>, window_params = [{transform_indices = @transform_0, window_bounds = array<i64: 8, 128>}, {transform_indices = @transform_1, window_bounds = array<i64: 128, 128>}, {transform_indices = @transform_2, window_bounds = array<i64: 8, 128>}]} {
    %c0 = arith.constant 0 : index
    %c0_0 = arith.constant 0 : index
    %0 = vector.load %arg3[%c0, %c0_0] : memref<8x128xf32, #tpu.memory_space<vmem>>, vector<8x128xf32>
    %c0_1 = arith.constant 0 : index
    %c0_2 = arith.constant 0 : index
    %1 = vector.load %arg4[%c0_1, %c0_2] : memref<128x128xf32, #tpu.memory_space<vmem>>, vector<128x128xf32>
    %cst = arith.constant dense<0.000000e+00> : vector<8x128xf32>
    %2 = tpu.matmul %0, %1, %cst {dimension_numbers = #tpu.dot_dimension_numbers<[1], [0], [0], [1], [0, 0, 1, 1], [], []>} : vector<8x128xf32>, vector<128x128xf32>, vector<8x128xf32> -> vector<8x128xf32>
    %c0_3 = arith.constant 0 : index
    %c0_4 = arith.constant 0 : index
    %3 = vector.load %arg5[%c0_3, %c0_4] : memref<8x128xf32, #tpu.memory_space<vmem>>, vector<8x128xf32>
    tpu.vector_store %arg5[%c0_3, %c0_4], %2 {strides = array<i32>} : memref<8x128xf32, #tpu.memory_space<vmem>>, vector<8x128xf32>,
    return
  }
  func.func @transform_0(%arg0: i32, %arg1: i32, %arg2: i32) -> (i32, i32) {
    %c0_i32 = arith.constant 0 : i32
    return %arg0, %arg2 : i32, i32
  }
  func.func @transform_1(%arg0: i32, %arg1: i32, %arg2: i32) -> (i32, i32) {
    %c0_i32 = arith.constant 0 : i32
    return %arg2, %arg1 : i32, i32
  }
  func.func @transform_2(%arg0: i32, %arg1: i32, %arg2: i32) -> (i32, i32) {
    %c0_i32 = arith.constant 0 : i32
    return %arg0, %arg1 : i32, i32
  }
}

</mosaic_0001>

<bundles_post_ra>
// kernel: tpu_custom_call.1
= control target key start
LH: loop header
LB: loop body
LE: loop exit
PB: predicated region body
PF: predicated region fallthrough
CT: control target
= control target key end

     0   :  { %7 = vsyncpa [#allocation3], 0  ;;  %s210_s0 = inlined_call_operand.hbm [shape: f32[8,128], index: 0, kind: input, shape index: {}]   ;;  %s211_s1 = inlined_call_operand.hbm [shape: f32[128,128], index: 1, kind: input, shape index: {}]   ;;  %s212_s2 = inlined_call_operand.hbm [shape: f32[8,128], index: 2, kind: output, shape index: {}]  }
   0x1   :  { %8 = vsyncpa [#allocation6], 0 }
   0x2   :  { %9 = vsyncpa [#allocation4], 0  ;;  %s15_s11 = sshll.u32 %s210_s0, 4  ;;  %s181_s12 = smov [#allocation2]   ;;  %s16_s11 = int_to_ptr.hbm [resolvable:$true] %s15_s11 }
   0x3   :  { %s17_s13 = sshll.u32 %s181_s12, 4  ;;  %s25_s16 = sshll.u32 %s211_s1, 4  ;;  %s18_s13 = int_to_ptr.vmem [resolvable:$true] %s17_s13  ;;  %s26_s16 = int_to_ptr.hbm [resolvable:$true] %s25_s16 }
   0x4   :  { %20 = dma.hbm_to_vmem [thread:$0]  %s16_s11, 128, %s18_s13, [#allocation3]  }
   0x5   :  { %s182_s17 = smov [#allocation5]   ;;  %s183_s19 = smov 128  }
   0x6   :  { %s27_s18 = sshll.u32 %s182_s17, 4  ;;  %s184_s20 = smov 8   ;;  %s28_s18 = int_to_ptr.vmem [resolvable:$true] %s27_s18 }
   0x7   :  { %33 = dma.hbm_to_vmem [thread:$0]  %s26_s16, 2048, %s28_s18, [#allocation6], %s183_s19, %s183_s19, %s184_s20  }
   0x8   :  { %175 = dma.done.wait [#allocation3], 128  }
   0x9   :  { %176 = vsyncadd [#allocation3], 4294967168 }
   0xa   :  { %177 = dma.done.wait [#allocation6], 2048  }
   0xb   :  { %178 = vsyncadd [#allocation6], 4294965248  ;;  %v58_v0 = vld [vmem:[#allocation5 + $0x78] sm:$0xff]  ;;  %v57_v1 = vld [vmem:[#allocation5 + $0x70] sm:$0xff]  ;;  %s185_s0 = smov [#allocation7]   ;;  %s87_s23 = sshll.u32 %s212_s2, 4  ;;  %s88_s23 = int_to_ptr.hbm [resolvable:$true] %s87_s23 }
   0xc   :  { %59 = vmatpush.msra.mxu0 %v58_v0  ;;  %v56_v2 = vld [vmem:[#allocation5 + $0x68] sm:$0xff]  ;;  %v55_v3 = vld [vmem:[#allocation5 + $0x60] sm:$0xff]  ;;  %v54_v4 = vld [vmem:[#allocation5 + $0x58] sm:$0xff]  ;;  %s85_s1 = sshll.u32 %s185_s0, 4  ;;  %s86_s1 = int_to_ptr.vmem [resolvable:$true] %s85_s1 }
   0xd   :  { %v53_v5 = vld [vmem:[#allocation5 + $0x50] sm:$0xff]  ;;  %v52_v6 = vld [vmem:[#allocation5 + $0x48] sm:$0xff]  ;;  %v51_v7 = vld [vmem:[#allocation5 + $0x40] sm:$0xff] }
   0xe   :  { %60 = vmatpush.msra.mxu0 %v57_v1  ;;  %v50_v8 = vld [vmem:[#allocation5 + $0x38] sm:$0xff]  ;;  %v49_v9 = vld [vmem:[#allocation5 + $0x30] sm:$0xff]  ;;  %v48_v10 = vld [vmem:[#allocation5 + $0x28] sm:$0xff] }
   0xf   :  { %v47_v11 = vld [vmem:[#allocation5 + $0x20] sm:$0xff]  ;;  %v46_v12 = vld [vmem:[#allocation5 + $0x18] sm:$0xff]  ;;  %v45_v13 = vld [vmem:[#allocation5 + $0x10] sm:$0xff] }
  0x10   :  { %61 = vmatpush.msra.mxu0 %v56_v2  ;;  %v44_v14 = vld [vmem:[#allocation5 + $0x8] sm:$0xff]  ;;  %v43_v15 = vld [vmem:[#allocation5] sm:$0xff]  ;;  %v42_v16 = vld [vmem:[#allocation2] sm:$0xff] }
  0x12   :  { %62 = vmatpush.msra.mxu0 %v55_v3 }
  0x14   :  { %63 = vmatpush.msra.mxu0 %v54_v4 }
  0x16   :  { %64 = vmatpush.msra.mxu0 %v53_v5 }
  0x18   :  { %65 = vmatpush.msra.mxu0 %v52_v6 }
  0x1a   :  { %66 = vmatpush.msra.mxu0 %v51_v7 }
  0x1c   :  { %67 = vmatpush.msra.mxu0 %v50_v8 }
  0x1e   :  { %68 = vmatpush.msra.mxu0 %v49_v9 }
  0x20   :  { %69 = vmatpush.msra.mxu0 %v48_v10 }
  0x22   :  { %70 = vmatpush.msra.mxu0 %v47_v11 }
  0x24   :  { %71 = vmatpush.msra.mxu0 %v46_v12 }
  0x26   :  { %72 = vmatpush.msra.mxu0 %v45_v13 }
  0x28   :  { %73 = vmatpush.msra.mxu0 %v44_v14 }
  0x2a   :  { %74 = vmatpush.msra.mxu0 %v43_v15 }
  0x2b   :  { %75 = vmatmul.f32.vlgmr.msra.gmra.mxu0 %v42_v16 }
  0xa8   :  { %v76_v17 = vpop.f32.mrf.mxu0 }
  0xa9   :  { %79 = vst [vmem:[#allocation7] sm:$0xff] %v76_v17 }
  0xaa   :  { %90 = dma.vmem_to_hbm [thread:$0]  %s86_s1, 128, %s88_s23, [#allocation4]  }
  0xab   :  { %179 = dma.done.wait [#allocation4], 128  }
  0xac   :  { %180 = vsyncadd [#allocation4], 4294967168 }
  0xad   :  { %95 = vsyncpa [#allocation3], 1 }
  0xae   :  { %96 = vsyncpa [#allocation6], 1 }
  0xaf   :  { %97 = vsyncpa [#allocation4], 1 }

</bundles_post_ra>
